<compile_context>
chip_gen: v7x
topology: tpu7x:2x2x1
jax: 0.10.0
libtpu: 0.0.40
codegen_flags: <defaults>
</compile_context>

<pallas_src>
import jax
import jax.numpy as jnp
from jax.experimental import pallas as pl
from jax.experimental.pallas import tpu as pltpu

# Padded layout constants (f32, lane = 128, sublane = 8).
HID_P = 128   # hidden(32) + constant-1 unit(1), padded to 128 (lane-dense h)
ACT_P = 128   # n_actions(2) padded to 128 (lane-dense, unmasked output stores)


def _round_up(n, m):
    return -(-n // m) * m


def mlp_kernel(x_ref, w1_ref, b1_ref, w2_ref, o_ref):
    # Layer 1: MXU matmul (small K is padded internally), f32 accumulate.
    h = jnp.dot(x_ref[...], w1_ref[...], preferred_element_type=jnp.float32)
    # Bias add (VPU broadcast) + ReLU.  b1_ref[0, hid] == 1.0 creates a
    # constant-1 hidden column (ReLU(1) == 1) that carries layer-2's bias
    # through the second matmul.
    h = jnp.maximum(h + b1_ref[...], 0.0)
    # Layer 2 (b2 folded into w2's row `hid`).  Lane-dense [block_b, 128] store.
    o_ref[...] = jnp.dot(
        h, w2_ref[...], preferred_element_type=jnp.float32
    ).astype(o_ref.dtype)


def pack_params(w1, b1, w2, b2):
    """One-time packing (outside the hot path).

    w1: [obs, hidden], b1: [hidden], w2: [hidden, n_actions], b2: [n_actions]
    Returns:
      w1_pad: [obs, HID_P]     (hidden lanes zero-padded)
      b1_pad: [1, HID_P]       (b1, plus a 1.0 at column `hidden`)
      w2_pad: [HID_P, ACT_P]   (w2, plus b2 in row `hidden`)
    """
    obs, hid = w1.shape
    n_act = w2.shape[1]
    assert hid + 1 <= HID_P and n_act <= ACT_P

    w1_pad = jnp.zeros((obs, HID_P), jnp.float32)
    w1_pad = w1_pad.at[:, :hid].set(w1.astype(jnp.float32))

    b1_pad = jnp.zeros((1, HID_P), jnp.float32)
    b1_pad = b1_pad.at[0, :hid].set(b1.astype(jnp.float32))
    b1_pad = b1_pad.at[0, hid].set(1.0)  # constant-1 unit -> applies b2 below

    w2_pad = jnp.zeros((HID_P, ACT_P), jnp.float32)
    w2_pad = w2_pad.at[:hid, :n_act].set(w2.astype(jnp.float32))
    w2_pad = w2_pad.at[hid, :n_act].set(b2.astype(jnp.float32))  # b2 row
    return w1_pad, b1_pad, w2_pad


@jax.jit
def net_forward_padded(x, w1_pad, b1_pad, w2_pad):
    """x: [B, obs_size] f32 -> padded logits [B_pad, ACT_P] f32.

    Valid logits live in [:B, :n_actions]; the consumer slices (or fuses)
    lazily so the hot path stays a single Pallas launch.
    """
    batch, obs = x.shape

    # Round the batch to a multiple of 256 and use at most 2 grid steps:
    #  - 2 "parallel" steps -> one tile per TensorCore on v7x,
    #  - >=256-row LHS tiles fill the 2x256 MXU on v6e/v7x,
    #  - on single-TC v5e/v6e the second step only costs ~0.35us.
    b_pad = _round_up(batch, 256)
    num_tiles = 2 if b_pad >= 512 else 1
    block_b = b_pad // num_tiles  # multiple of 128 (hence of 8)

    if b_pad != batch:
        # Only taken for odd batch sizes; padded rows are sliced away later.
        x = jnp.pad(x, ((0, b_pad - batch), (0, 0)))

    out = pl.pallas_call(
        mlp_kernel,
        out_shape=jax.ShapeDtypeStruct((b_pad, ACT_P), jnp.float32),
        grid_spec=pltpu.PrefetchScalarGridSpec(
            num_scalar_prefetch=0,
            grid=(num_tiles,),
            in_specs=[
                # batch tile marches down the grid; params stay resident
                # (constant index_map => no re-DMA between steps).
                pl.BlockSpec((block_b, obs), lambda i: (i, 0)),
                pl.BlockSpec((obs, HID_P), lambda i: (0, 0)),
                pl.BlockSpec((1, HID_P), lambda i: (0, 0)),
                pl.BlockSpec((HID_P, ACT_P), lambda i: (0, 0)),
            ],
            out_specs=pl.BlockSpec((block_b, ACT_P), lambda i: (i, 0)),
        ),
        compiler_params=pltpu.CompilerParams(
            # Shard the (at most 2) batch tiles across TensorCores on v7x;
            # harmless on single-TC v5e/v6e.
            dimension_semantics=("parallel",),
        ),
    )(x, w1_pad, b1_pad, w2_pad)
    return out


def init_params(key, obs_size, hidden_size, n_actions):
    """Deterministic synthetic parameters (PyTorch-like uniform init).

    Weights stored transposed vs PyTorch: w1 [obs, hidden], w2 [hidden, n_act].
    """
    k1, k2, k3, k4 = jax.random.split(key, 4)
    bound1 = 1.0 / jnp.sqrt(obs_size)
    bound2 = 1.0 / jnp.sqrt(hidden_size)
    w1 = jax.random.uniform(k1, (obs_size, hidden_size), jnp.float32, -bound1, bound1)
    b1 = jax.random.uniform(k2, (hidden_size,), jnp.float32, -bound1, bound1)
    w2 = jax.random.uniform(k3, (hidden_size, n_actions), jnp.float32, -bound2, bound2)
    b2 = jax.random.uniform(k4, (n_actions,), jnp.float32, -bound2, bound2)
    return w1, b1, w2, b2


if __name__ == "__main__":
    # CartPole-like sizes; batch sized to exercise the 2-tile grid.
    obs_size, hidden_size, n_actions, batch = 4, 32, 2, 512

    key = jax.random.PRNGKey(0)
    kx, kp = jax.random.split(key)
    x = jax.random.normal(kx, (batch, obs_size), dtype=jnp.float32)
    w1, b1, w2, b2 = init_params(kp, obs_size, hidden_size, n_actions)

    # One-time packing of the parameters (outside the hot path).
    w1_pad, b1_pad, w2_pad = pack_params(w1, b1, w2, b2)

    logits_padded = net_forward_padded(x, w1_pad, b1_pad, w2_pad)
    logits_padded = jax.block_until_ready(logits_padded)

    # Consumer-side lazy slice (outside the jitted hot path), only needed here
    # for the correctness check against the un-packed reference.
    out = logits_padded[:batch, :n_actions]
    ref = jnp.maximum(x @ w1 + b1[None, :], 0.0) @ w2 + b2[None, :]
    assert out.shape == (batch, n_actions)
    assert jnp.allclose(out, ref, atol=1e-4, rtol=1e-4)

    print("KERNEL_OK")
</pallas_src>

<mosaic_0001>
module attributes {stable_mosaic.version = 11 : i64} {
  func.func @mlp_kernel(%arg0: i32, %arg1: memref<256x4xf32, #tpu.memory_space<vmem>>, %arg2: memref<4x128xf32, #tpu.memory_space<vmem>>, %arg3: memref<1x128xf32, #tpu.memory_space<vmem>>, %arg4: memref<128x128xf32, #tpu.memory_space<vmem>>, %arg5: memref<256x128xf32, #tpu.memory_space<vmem>>) attributes {dimension_semantics = [#tpu.dimension_semantics<parallel>], iteration_bounds = array<i64: 2>, scalar_prefetch = 0 : i64, scratch_operands = 0 : i64, tpu.core_type = #tpu.core_type<tc>, window_params = [{transform_indices = @transform_0, window_bounds = array<i64: 256, 4>}, {pipeline_mode = #tpu.pipeline_mode<synchronous>, transform_indices = @transform_1, window_bounds = array<i64: 4, 128>}, {pipeline_mode = #tpu.pipeline_mode<synchronous>, transform_indices = @transform_2, window_bounds = array<i64: 1, 128>}, {pipeline_mode = #tpu.pipeline_mode<synchronous>, transform_indices = @transform_3, window_bounds = array<i64: 128, 128>}, {transform_indices = @transform_4, window_bounds = array<i64: 256, 128>}]} {
    %c0 = arith.constant 0 : index
    %c0_0 = arith.constant 0 : index
    %0 = vector.load %arg1[%c0, %c0_0] : memref<256x4xf32, #tpu.memory_space<vmem>>, vector<256x4xf32>
    %c0_1 = arith.constant 0 : index
    %c0_2 = arith.constant 0 : index
    %1 = vector.load %arg2[%c0_1, %c0_2] : memref<4x128xf32, #tpu.memory_space<vmem>>, vector<4x128xf32>
    %cst = arith.constant dense<0.000000e+00> : vector<256x128xf32>
    %2 = tpu.matmul %0, %1, %cst {dimension_numbers = #tpu.dot_dimension_numbers<[1], [0], [0], [1], [0, 0, 1, 1], [], []>} : vector<256x4xf32>, vector<4x128xf32>, vector<256x128xf32> -> vector<256x128xf32>
    %c0_3 = arith.constant 0 : index
    %c0_4 = arith.constant 0 : index
    %3 = vector.load %arg3[%c0_3, %c0_4] : memref<1x128xf32, #tpu.memory_space<vmem>>, vector<1x128xf32>
    %4 = vector.broadcast %3 : vector<1x128xf32> to vector<256x128xf32>
    %5 = arith.addf %2, %4 : vector<256x128xf32>
    %cst_5 = arith.constant 0.000000e+00 : f32
    %6 = vector.broadcast %cst_5 : f32 to vector<256x128xf32>
    %7 = arith.maximumf %5, %6 : vector<256x128xf32>
    %c0_6 = arith.constant 0 : index
    %c0_7 = arith.constant 0 : index
    %8 = vector.load %arg4[%c0_6, %c0_7] : memref<128x128xf32, #tpu.memory_space<vmem>>, vector<128x128xf32>
    %cst_8 = arith.constant dense<0.000000e+00> : vector<256x128xf32>
    %9 = tpu.matmul %7, %8, %cst_8 {dimension_numbers = #tpu.dot_dimension_numbers<[1], [0], [0], [1], [0, 0, 1, 1], [], []>} : vector<256x128xf32>, vector<128x128xf32>, vector<256x128xf32> -> vector<256x128xf32>
    %c0_9 = arith.constant 0 : index
    %c0_10 = arith.constant 0 : index
    %10 = vector.load %arg5[%c0_9, %c0_10] : memref<256x128xf32, #tpu.memory_space<vmem>>, vector<256x128xf32>
    tpu.vector_store %arg5[%c0_9, %c0_10], %9 {strides = array<i32>} : memref<256x128xf32, #tpu.memory_space<vmem>>, vector<256x128xf32>,
    return
  }
  func.func @transform_0(%arg0: i32) -> (i32, i32) {
    %c0_i32 = arith.constant 0 : i32
    %c0_i32_0 = arith.constant 0 : i32
    return %arg0, %c0_i32 : i32, i32
  }
  func.func @transform_1(%arg0: i32) -> (i32, i32) {
    %c0_i32 = arith.constant 0 : i32
    %c0_i32_0 = arith.constant 0 : i32
    %c0_i32_1 = arith.constant 0 : i32
    return %c0_i32, %c0_i32_0 : i32, i32
  }
  func.func @transform_2(%arg0: i32) -> (i32, i32) {
    %c0_i32 = arith.constant 0 : i32
    %c0_i32_0 = arith.constant 0 : i32
    %c0_i32_1 = arith.constant 0 : i32
    return %c0_i32, %c0_i32_0 : i32, i32
  }
  func.func @transform_3(%arg0: i32) -> (i32, i32) {
    %c0_i32 = arith.constant 0 : i32
    %c0_i32_0 = arith.constant 0 : i32
    %c0_i32_1 = arith.constant 0 : i32
    return %c0_i32, %c0_i32_0 : i32, i32
  }
  func.func @transform_4(%arg0: i32) -> (i32, i32) {
    %c0_i32 = arith.constant 0 : i32
    %c0_i32_0 = arith.constant 0 : i32
    return %arg0, %c0_i32 : i32, i32
  }
}

</mosaic_0001>

<bundles_post_ra>
// kernel: net_forward_padded.1
= control target key start
LH: loop header
LB: loop body
LE: loop exit
PB: predicated region body
PF: predicated region fallthrough
CT: control target
= control target key end

     0   :  { %9 = vsyncpa [#allocation3], 0  ;;  %s1680_s0 = inlined_call_operand.vmem [shape: f32[512,4], index: 0, kind: input, shape index: {}]   ;;  %s1681_s1 = inlined_call_operand.vmem [shape: f32[4,128], index: 1, kind: input, shape index: {}]   ;;  %s1682_s2 = inlined_call_operand.vmem [shape: f32[1,128], index: 2, kind: input, shape index: {}]   ;;  %s1683_s3 = inlined_call_operand.vmem [shape: f32[128,128], index: 3, kind: input, shape index: {}]   ;;  %s1684_s4 = inlined_call_operand.hbm [shape: f32[512,128], index: 4, kind: output, shape index: {}]  }
   0x1   :  { %11 = vsyncpa [#allocation3 + $0x1], 0  ;;  %s1385_s15 = smov 0   ;;  %s1387_s16 = smov 0  }
   0x2   :  { %s1389_s17 = smov 0   ;;  %s1391_s18 = smov 0  }
   0x3 LB: > { %s1406_s19 = sadd.s32 4294967295, %s1355_s18   ;;  %s946_s20 = sadd.s32 4294967294, %s1355_s18   ;;  %s1355_s18 = sphi %s1391_s18, %s1690_s18   ;;  %s1351_s17 = sphi %s1389_s17, %s1689_s17   ;;  %s1347_s16 = sphi %s1387_s16, %s1688_s16   ;;  %s1343_s15 = sphi %s1385_s15, %s1687_s15  }
   0x4   : > { %s1410_s21 = sadd.s32 1, %s1355_s18   ;;  %s113_s22 = sadd.s32 1, %s1351_s17 }
   0x5   : > { %s110_s23 = ssub.s32 %s1355_s18, %s1410_s21  ;;  %p123_p0 = scmp.ne.s32.totalorder %s1351_s17, %s1347_s16 }
   0x6   : > { %p111_p1 = scmp.eq.s32.totalorder %s110_s23, 0  ;;  %p124_p2 = scmp.eq.s32.totalorder %s1406_s19, 1 }
   0x7   : > { %p129_p3 = scmp.ne.s32.totalorder %s1347_s16, %s1343_s15  ;;  %p130_p4 = scmp.eq.s32.totalorder %s946_s20, 1 }
   0x8   : > { %s1421_s24 = scalar_select %p111_p1, %s1351_s17, %s113_s22  }
   0x9   : > { %p1423_p5 = por %p124_p2, %p123_p0  ;;  %p1427_p6 = por %p130_p4, %p129_p3 }
   0xa   : > { %p949_p7 = scmp.ge.s32.totalorder %s1355_s18, 1  ;;  %p166_p8 = scmp.lt.s32.totalorder %s1355_s18, 3 }
   0xc   : > { %p167_p9 = pnand %p949_p7, %p166_p8 }
   0xd   : > { %v231_v0 = vld [vmem:[%s1681_s1] sm:$0xf] (!%p167_p9)  ;;  %vm336_vm0 = vcmask (!%p167_p9), 1043456   ;;  %s951_s29 = sshll.u32 (!%p167_p9), %s1406_s19, 5  ;;  %v598_v2 = vld [vmem:[%s1683_s3 + $0x8] sm:$0xff] (!%p167_p9)  ;;  %v599_v3 = vld [vmem:[%s1683_s3 + $0x10] sm:$0xff] (!%p167_p9) }
   0xe   : > { %170 = sbr.rel (%p167_p9) target bundleno = 532 (0x214), region = 36  ;;  %v597_v1 = vld [vmem:[%s1683_s3] sm:$0xff] (!%p167_p9)  ;;  %1074 = vmatprep.subr.msk.mxu0 (!%p167_p9), %vm336_vm0, %v231_v0  ;;  %p193_p10 = scmp.lt.s32.totalorder (!%p167_p9), %s951_s29, 63  ;;  %v600_v4 = vld [vmem:[%s1683_s3 + $0x18] sm:$0xff] (!%p167_p9)  ;;  %vm239_vm1 = vcmask (!%p167_p9), 31744   ;;  %v602_v8 = vld [vmem:[%s1683_s3 + $0x28] sm:$0xff] (!%p167_p9) }
   0xf   : > { %1075 = vmatpush3.msk.msra.mxu0 (!%p167_p9), %vm336_vm0, %v231_v0  ;;  %v1204_v5 = vpack.c.bf16 (!%p167_p9), %v598_v2, %v597_v1  ;;  %v1208_v6 = vpack.c.bf16 (!%p167_p9), %v600_v4, %v599_v3  ;;  %v601_v7 = vld [vmem:[%s1683_s3 + $0x20] sm:$0xff] (!%p167_p9)  ;;  %v603_v14 = vld [vmem:[%s1683_s3 + $0x30] sm:$0xff] (!%p167_p9)  ;;  %v604_v15 = vld [vmem:[%s1683_s3 + $0x38] sm:$0xff] (!%p167_p9)  ;;  %s992_s11 = sshll.u32 (!%p167_p9), %s1406_s19, 12  ;;  %s1357_s27 = smov (!%p167_p9), [#allocation2]  }
  0x10   : > { %v1212_v12 = vpack.c.bf16 (!%p167_p9), %v602_v8, %v601_v7  ;;  %v1216_v17 = vpack.c.bf16 (!%p167_p9), %v604_v15, %v603_v14  ;;  %v605_v19 = vld [vmem:[%s1683_s3 + $0x40] sm:$0xff] (!%p167_p9)  ;;  %v606_v20 = vld [vmem:[%s1683_s3 + $0x48] sm:$0xff] (!%p167_p9)  ;;  %v607_v24 = vld [vmem:[%s1683_s3 + $0x50] sm:$0xff] (!%p167_p9)  ;;  %s1631_s22 = scalar_lea.hbm (!%p167_p9), %s1684_s4, %s992_s11  ;;  %s1297_s28 = sshll.u32 (!%p167_p9), %s1357_s27, 4  ;;  %s1298_s28 = int_to_ptr.vmem [resolvable:$false] %s1297_s28 }
  0x11   : > { %1205 = vmatprep.subr.bf16.mxu0 (!%p167_p9), %v1204_v5  ;;  %1236 = vmatprep.subr.bf16.mxu1 (!%p167_p9), %v1204_v5  ;;  %v1220_v22 = vpack.c.bf16 (!%p167_p9), %v606_v20, %v605_v19  ;;  %v608_v25 = vld [vmem:[%s1683_s3 + $0x58] sm:$0xff] (!%p167_p9)  ;;  %v609_v29 = vld [vmem:[%s1683_s3 + $0x60] sm:$0xff] (!%p167_p9)  ;;  %v610_v30 = vld [vmem:[%s1683_s3 + $0x68] sm:$0xff] (!%p167_p9) }
  0x12   : > { %1244 = vmatpush3.bf16.msra.mxu1 (!%p167_p9), %v1204_v5  ;;  %v1224_v27 = vpack.c.bf16 (!%p167_p9), %v608_v25, %v607_v24  ;;  %v1228_v32 = vpack.c.bf16 (!%p167_p9), %v610_v30, %v609_v29  ;;  %v611_v54 = vld [vmem:[%s1683_s3 + $0x70] sm:$0xff] (!%p167_p9)  ;;  %v612_v55 = vld [vmem:[%s1683_s3 + $0x78] sm:$0xff] (!%p167_p9)  ;;  %v1557_v57 = vld [vmem:[%s1682_s2] ss:$0 sm:$0xff] (!%p167_p9) }
  0x13   : > { %1237 = vmatprep.subr.bf16.mxu1 (!%p167_p9), %v1208_v6  ;;  %v1232_v56 = vpack.c.bf16 (!%p167_p9), %v612_v55, %v611_v54 }
  0x15   : > { %s1692_s29 = smov (!%p193_p10, %s951_s29), 63 }
  0x16   : > { %s952_s12 = sshll.u32 %s1692_s29, 3  ;;  %1245 = vmatpush3.bf16.msra.mxu1 %v1208_v6  ;;  %s1299_s29 = scalar_lea.vmem %s1298_s28, 8192 }
  0x17   : > { %s1452_s20 = scalar_lea.vmem %s1680_s0, %s952_s12  ;;  %1238 = vmatprep.subr.bf16.mxu1 %v1212_v12 }
  0x18   : > { %v199_v9 = vld [vmem:[%s1452_s20] sm:$0xff]  ;;  %v200_v10 = vld [vmem:[%s1452_s20 + $0x8] sm:$0xff]  ;;  %v201_v11 = vld [vmem:[%s1452_s20 + $0x10] sm:$0xff] }
  0x19   : > { %1076 = vmatprep.mubr.msk.f32.mxu0 %vm239_vm1, %v199_v9  ;;  %v202_v13 = vld [vmem:[%s1452_s20 + $0x18] sm:$0xff]  ;;  %v203_v16 = vld [vmem:[%s1452_s20 + $0x20] sm:$0xff]  ;;  %v204_v18 = vld [vmem:[%s1452_s20 + $0x28] sm:$0xff] }
  0x1a   : > { %1077 = vmatmul.mubr.msk.f32.vlgmr.msra.gmra.mrb[0].mxu0 %vm239_vm1, %v200_v10  ;;  %1246 = vmatpush3.bf16.msra.mxu1 %v1212_v12  ;;  %v205_v21 = vld [vmem:[%s1452_s20 + $0x30] sm:$0xff]  ;;  %v206_v23 = vld [vmem:[%s1452_s20 + $0x38] sm:$0xff]  ;;  %v207_v26 = vld [vmem:[%s1452_s20 + $0x40] sm:$0xff] }
  0x1b   : > { %1079 = vmatprep.mubr.msk.f32.mxu0 %vm239_vm1, %v201_v11  ;;  %1207 = vmatpush3.bf16.msra.mxu0 %v1204_v5  ;;  %v208_v28 = vld [vmem:[%s1452_s20 + $0x48] sm:$0xff]  ;;  %v209_v31 = vld [vmem:[%s1452_s20 + $0x50] sm:$0xff]  ;;  %v210_v33 = vld [vmem:[%s1452_s20 + $0x58] sm:$0xff] }
  0x1c   : > { %1209 = vmatprep.subr.bf16.mxu0 %v1208_v6  ;;  %1239 = vmatprep.subr.bf16.mxu1 %v1216_v17  ;;  %v211_v34 = vld [vmem:[%s1452_s20 + $0x60] sm:$0xff]  ;;  %v212_v35 = vld [vmem:[%s1452_s20 + $0x68] sm:$0xff]  ;;  %v213_v36 = vld [vmem:[%s1452_s20 + $0x70] sm:$0xff] }
  0x1d   : > { %v214_v37 = vld [vmem:[%s1452_s20 + $0x78] sm:$0xff]  ;;  %v215_v38 = vld [vmem:[%s1452_s20 + $0x80] sm:$0xff]  ;;  %v216_v39 = vld [vmem:[%s1452_s20 + $0x88] sm:$0xff] }
  0x1e   : > { %1080 = vmatmul.mubr.msk.f32.gmra.mrb[2].mxu0 %vm239_vm1, %v202_v13  ;;  %1247 = vmatpush3.bf16.msra.mxu1 %v1216_v17  ;;  %v217_v40 = vld [vmem:[%s1452_s20 + $0x90] sm:$0xff]  ;;  %v218_v41 = vld [vmem:[%s1452_s20 + $0x98] sm:$0xff]  ;;  %v219_v42 = vld [vmem:[%s1452_s20 + $0xa0] sm:$0xff] }
  0x1f   : > { %1082 = vmatprep.mubr.msk.f32.mxu0 %vm239_vm1, %v203_v16  ;;  %1211 = vmatpush3.bf16.msra.mxu0 %v1208_v6  ;;  %v220_v43 = vld [vmem:[%s1452_s20 + $0xa8] sm:$0xff]  ;;  %v221_v44 = vld [vmem:[%s1452_s20 + $0xb0] sm:$0xff]  ;;  %v222_v45 = vld [vmem:[%s1452_s20 + $0xb8] sm:$0xff] }
  0x20   : > { %1213 = vmatprep.subr.bf16.mxu0 %v1212_v12  ;;  %1240 = vmatprep.subr.bf16.mxu1 %v1220_v22  ;;  %v223_v46 = vld [vmem:[%s1452_s20 + $0xc0] sm:$0xff]  ;;  %v224_v47 = vld [vmem:[%s1452_s20 + $0xc8] sm:$0xff]  ;;  %v225_v48 = vld [vmem:[%s1452_s20 + $0xd0] sm:$0xff] }
  0x21   : > { %v226_v49 = vld [vmem:[%s1452_s20 + $0xd8] sm:$0xff]  ;;  %v227_v50 = vld [vmem:[%s1452_s20 + $0xe0] sm:$0xff]  ;;  %v228_v51 = vld [vmem:[%s1452_s20 + $0xe8] sm:$0xff] }
  0x22   : > { %1083 = vmatmul.mubr.msk.f32.gmra.mrb[4].mxu0 %vm239_vm1, %v204_v18  ;;  %1248 = vmatpush3.bf16.msra.mxu1 %v1220_v22  ;;  %v229_v52 = vld [vmem:[%s1452_s20 + $0xf0] sm:$0xff]  ;;  %v230_v53 = vld [vmem:[%s1452_s20 + $0xf8] sm:$0xff]  ;;  %s189_s20 = sand.u32 1, %s1347_s16  }
  0x23   : > { %1085 = vmatprep.mubr.msk.f32.mxu0 %vm239_vm1, %v205_v21  ;;  %1215 = vmatpush3.bf16.msra.mxu0 %v1212_v12  ;;  %s950_s9 = sshll.u32 %s189_s20, 8  ;;  %s1639_s19 = scalar_lea.sflag [#allocation3], %s189_s20 }
  0x24   : > { %1217 = vmatprep.subr.bf16.mxu0 %v1216_v17  ;;  %1241 = vmatprep.subr.bf16.mxu1 %v1224_v27  ;;  %s1594_s10 = scalar_lea.vmem [#allocation2], %s950_s9 }
  0x25   : > { %s884_s12 = sshll.u32 %s1594_s10, 4  ;;  %s1633_s12 = int_to_ptr.vmem [resolvable:$true] %s884_s12 }
  0x26   : > { %1086 = vmatmul.mubr.msk.f32.gmra.mrb[6].mxu0 %vm239_vm1, %v206_v23  ;;  %1249 = vmatpush3.bf16.msra.mxu1 %v1224_v27  ;;  %s1293_s23 = scalar_lea.vmem %s1633_s12, 4096  ;;  %p1300_p0 = scmp.lt.s32.totalorder %s1633_s12, %s1298_s28 }
  0x27   : > { %1088 = vmatprep.mubr.msk.f32.mxu0 %vm239_vm1, %v207_v26  ;;  %1219 = vmatpush3.bf16.msra.mxu0 %v1216_v17  ;;  %p1294_p11 = scmp.ne.s32.totalorder %s1633_s12, %s1293_s23  ;;  %p1301_p1 = scmp.lt.s32.totalorder %s1299_s29, %s1293_s23 }
  0x28   : > { %1221 = vmatprep.subr.bf16.mxu0 %v1220_v22  ;;  %1242 = vmatprep.subr.bf16.mxu1 %v1228_v32 }
  0x29   : > { %p1295_p12 = pnand %p1294_p11, %p1423_p5  ;;  %p1302_p2 = por %p1301_p1, %p1300_p0 }
  0x2a   : > { %1089 = vmatmul.mubr.msk.f32.gmra.mrb[8].mxu0 %vm239_vm1, %v208_v28  ;;  %1250 = vmatpush3.bf16.msra.mxu1 %v1228_v32 }
  0x2b   : > { %1091 = vmatprep.mubr.msk.f32.mxu0 %vm239_vm1, %v209_v31  ;;  %1223 = vmatpush3.bf16.msra.mxu0 %v1220_v22  ;;  %p1296_p13 = pneg %p1295_p12 }
  0x2c   : > { %1225 = vmatprep.subr.bf16.mxu0 %v1224_v27  ;;  %1243 = vmatprep.subr.bf16.mxu1 %v1232_v56 }
  0x2d   : > { %p1303_p3 = pnand %p1302_p2, %p1296_p13 }
  0x2e   : > { %1092 = vmatmul.mubr.msk.f32.gmra.mrb[10].mxu0 %vm239_vm1, %v210_v33  ;;  %1251 = vmatpush3.bf16.msra.mxu1 %v1232_v56 }
  0x2f   : > { %1094 = vmatprep.mubr.msk.f32.mxu0 %vm239_vm1, %v211_v34  ;;  %1227 = vmatpush3.bf16.msra.mxu0 %v1224_v27 }
  0x30   : > { %1229 = vmatprep.subr.bf16.mxu0 %v1228_v32 }
  0x32   : > { %1095 = vmatmul.mubr.msk.f32.gmra.mrb[12].mxu0 %vm239_vm1, %v212_v35 }
  0x33   : > { %1097 = vmatprep.mubr.msk.f32.mxu0 %vm239_vm1, %v213_v36  ;;  %1231 = vmatpush3.bf16.msra.mxu0 %v1228_v32 }
  0x34   : > { %1233 = vmatprep.subr.bf16.mxu0 %v1232_v56 }
  0x36   : > { %1098 = vmatmul.mubr.msk.f32.gmra.mrb[14].mxu0 %vm239_vm1, %v214_v37 }
  0x37   : > { %1100 = vmatprep.mubr.msk.f32.mxu0 %vm239_vm1, %v215_v38  ;;  %1235 = vmatpush3.bf16.msra.mxu0 %v1232_v56 }
  0x3a   : > { %1101 = vmatmul.mubr.msk.f32.gmra.mrb[16].mxu0 %vm239_vm1, %v216_v39 }
  0x3b   : > { %1103 = vmatprep.mubr.msk.f32.mxu0 %vm239_vm1, %v217_v40 }
  0x3e   : > { %1104 = vmatmul.mubr.msk.f32.gmra.mrb[18].mxu0 %vm239_vm1, %v218_v41 }
  0x3f   : > { %1106 = vmatprep.mubr.msk.f32.mxu0 %vm239_vm1, %v219_v42 }
  0x42   : > { %1107 = vmatmul.mubr.msk.f32.gmra.mrb[20].mxu0 %vm239_vm1, %v220_v43 }
  0x43   : > { %1109 = vmatprep.mubr.msk.f32.mxu0 %vm239_vm1, %v221_v44 }
  0x46   : > { %1110 = vmatmul.mubr.msk.f32.gmra.mrb[22].mxu0 %vm239_vm1, %v222_v45 }
  0x47   : > { %1112 = vmatprep.mubr.msk.f32.mxu0 %vm239_vm1, %v223_v46 }
  0x4a   : > { %1113 = vmatmul.mubr.msk.f32.gmra.mrb[24].mxu0 %vm239_vm1, %v224_v47 }
  0x4b   : > { %1115 = vmatprep.mubr.msk.f32.mxu0 %vm239_vm1, %v225_v48 }
  0x4e   : > { %1116 = vmatmul.mubr.msk.f32.gmra.mrb[26].mxu0 %vm239_vm1, %v226_v49 }
  0x4f   : > { %1118 = vmatprep.mubr.msk.f32.mxu0 %vm239_vm1, %v227_v50 }
  0x52   : > { %1119 = vmatmul.mubr.msk.f32.gmra.mrb[28].mxu0 %vm239_vm1, %v228_v51 }
  0x53   : > { %1121 = vmatprep.mubr.msk.f32.mxu0 %vm239_vm1, %v229_v52 }
  0x56   : > { %1122 = vmatmul.mubr.msk.f32.gmra.mrb[30].mxu0 %vm239_vm1, %v230_v53 }
  0xed   : > { %v1078_v58 = vpop.f32.mrb[0].mxu0 }
  0xee   : > { %v412_v59 = vadd.f32 %v1078_v58, %v1557_v57  ;;  %v406_v60 = vpop.f32.mrb[1].mxu0 }
  0xef   : > { %v407_v61 = vadd.f32 %v1557_v57, %v406_v60 }
  0xf0   : > { %v566_v0 = vmax.f32 %v412_v59, 0.0 }
  0xf1   : > { %v565_v62 = vmax.f32 %v407_v61, 0.0  ;;  %v1081_v63 = vpop.f32.mrb[2].mxu0 }
  0xf2   : > { %v422_v1 = vadd.f32 %v1081_v63, %v1557_v57  ;;  %v416_v2 = vpop.f32.mrb[3].mxu0 }
  0xf3   : > { %v417_v3 = vadd.f32 %v1557_v57, %v416_v2  ;;  %1156 = vmatprep.mubr.f32.mxu0 %v565_v62 }
  0xf4   : > { %1157 = vmatmul.mubr.f32.vlgmr.msra.gmra.mrb[32].mxu0 %v566_v0  ;;  %v568_v6 = vmax.f32 %v422_v1, 0.0 }
  0xf5   : > { %v567_v4 = vmax.f32 %v417_v3, 0.0  ;;  %v1084_v5 = vpop.f32.mrb[4].mxu0 }
  0xf6   : > { %v432_v7 = vadd.f32 %v1084_v5, %v1557_v57  ;;  %v426_v8 = vpop.f32.mrb[5].mxu0 }
  0xf7   : > { %v427_v9 = vadd.f32 %v1557_v57, %v426_v8  ;;  %1159 = vmatprep.mubr.f32.mxu0 %v567_v4 }
  0xf8   : > { %1160 = vmatmul.mubr.f32.gmra.mrb[34].mxu0 %v568_v6  ;;  %v570_v12 = vmax.f32 %v432_v7, 0.0 }
  0xf9   : > { %v569_v10 = vmax.f32 %v427_v9, 0.0  ;;  %v1087_v11 = vpop.f32.mrb[6].mxu0 }
  0xfa   : > { %v442_v13 = vadd.f32 %v1087_v11, %v1557_v57  ;;  %v436_v14 = vpop.f32.mrb[7].mxu0 }
  0xfb   : > { %1162 = vmatprep.mubr.f32.mxu0 %v569_v10  ;;  %v437_v15 = vadd.f32 %v1557_v57, %v436_v14 }
  0xfc   : > { %1163 = vmatmul.mubr.f32.gmra.mrb[36].mxu0 %v570_v12  ;;  %v572_v18 = vmax.f32 %v442_v13, 0.0 }
  0xfd   : > { %v1090_v16 = vpop.f32.mrb[8].mxu0  ;;  %v571_v17 = vmax.f32 %v437_v15, 0.0 }
  0xfe   : > { %v452_v19 = vadd.f32 %v1090_v16, %v1557_v57  ;;  %v446_v20 = vpop.f32.mrb[9].mxu0 }
  0xff   : > { %v447_v21 = vadd.f32 %v1557_v57, %v446_v20  ;;  %1165 = vmatprep.mubr.f32.mxu1 %v571_v17 }
 0x100   : > { %1166 = vmatmul.mubr.f32.vlgmr.msra.gmra.mrb[0].mxu1 %v572_v18  ;;  %v574_v24 = vmax.f32 %v452_v19, 0.0 }
 0x101   : > { %v573_v22 = vmax.f32 %v447_v21, 0.0  ;;  %v1093_v23 = vpop.f32.mrb[10].mxu0 }
 0x102   : > { %v462_v25 = vadd.f32 %v1093_v23, %v1557_v57  ;;  %v456_v26 = vpop.f32.mrb[11].mxu0 }
 0x103   : > { %v457_v27 = vadd.f32 %v1557_v57, %v456_v26  ;;  %1168 = vmatprep.mubr.f32.mxu1 %v573_v22 }
 0x104   : > { %1169 = vmatmul.mubr.f32.gmra.mrb[2].mxu1 %v574_v24  ;;  %v576_v30 = vmax.f32 %v462_v25, 0.0 }
 0x105   : > { %v575_v28 = vmax.f32 %v457_v27, 0.0  ;;  %v1096_v29 = vpop.f32.mrb[12].mxu0 }
 0x106   : > { %v472_v31 = vadd.f32 %v1096_v29, %v1557_v57  ;;  %v466_v32 = vpop.f32.mrb[13].mxu0 }
 0x107   : > { %v467_v33 = vadd.f32 %v1557_v57, %v466_v32  ;;  %1171 = vmatprep.mubr.f32.mxu1 %v575_v28 }
 0x108   : > { %1172 = vmatmul.mubr.f32.gmra.mrb[4].mxu1 %v576_v30  ;;  %v578_v36 = vmax.f32 %v472_v31, 0.0 }
 0x109   : > { %v577_v34 = vmax.f32 %v467_v33, 0.0  ;;  %v1099_v35 = vpop.f32.mrb[14].mxu0 }
 0x10a   : > { %v482_v37 = vadd.f32 %v1099_v35, %v1557_v57  ;;  %v476_v38 = vpop.f32.mrb[15].mxu0 }
 0x10b   : > { %v477_v39 = vadd.f32 %v1557_v57, %v476_v38  ;;  %1174 = vmatprep.mubr.f32.mxu1 %v577_v34 }
 0x10c   : > { %1175 = vmatmul.mubr.f32.gmra.mrb[6].mxu1 %v578_v36  ;;  %v580_v42 = vmax.f32 %v482_v37, 0.0 }
 0x10d   : > { %v579_v40 = vmax.f32 %v477_v39, 0.0  ;;  %v1102_v41 = vpop.f32.mrb[16].mxu0 }
 0x10e   : > { %v492_v43 = vadd.f32 %v1102_v41, %v1557_v57  ;;  %v486_v44 = vpop.f32.mrb[17].mxu0 }
 0x10f   : > { %v487_v45 = vadd.f32 %v1557_v57, %v486_v44  ;;  %1177 = vmatprep.mubr.f32.mxu1 %v579_v40 }
 0x110   : > { %1178 = vmatmul.mubr.f32.gmra.mrb[8].mxu1 %v580_v42  ;;  %v582_v48 = vmax.f32 %v492_v43, 0.0 }
 0x111   : > { %v581_v46 = vmax.f32 %v487_v45, 0.0  ;;  %v1105_v47 = vpop.f32.mrb[18].mxu0 }
 0x112   : > { %v502_v49 = vadd.f32 %v1105_v47, %v1557_v57  ;;  %v496_v50 = vpop.f32.mrb[19].mxu0 }
 0x113   : > { %v497_v51 = vadd.f32 %v1557_v57, %v496_v50  ;;  %1180 = vmatprep.mubr.f32.mxu1 %v581_v46 }
 0x114   : > { %1181 = vmatmul.mubr.f32.gmra.mrb[10].mxu1 %v582_v48  ;;  %v584_v54 = vmax.f32 %v502_v49, 0.0 }
 0x115   : > { %v583_v52 = vmax.f32 %v497_v51, 0.0  ;;  %v1108_v53 = vpop.f32.mrb[20].mxu0 }
 0x116   : > { %v512_v55 = vadd.f32 %v1108_v53, %v1557_v57  ;;  %v506_v56 = vpop.f32.mrb[21].mxu0 }
 0x117   : > { %v507_v58 = vadd.f32 %v1557_v57, %v506_v56  ;;  %1183 = vmatprep.mubr.f32.mxu1 %v583_v52 }
 0x118   : > { %1184 = vmatmul.mubr.f32.gmra.mrb[12].mxu1 %v584_v54  ;;  %v586_v61 = vmax.f32 %v512_v55, 0.0 }
 0x119   : > { %v585_v59 = vmax.f32 %v507_v58, 0.0  ;;  %v1111_v60 = vpop.f32.mrb[22].mxu0 }
 0x11a   : > { %v522_v62 = vadd.f32 %v1111_v60, %v1557_v57  ;;  %v516_v63 = vpop.f32.mrb[23].mxu0 }
 0x11b   : > { %v517_v0 = vadd.f32 %v1557_v57, %v516_v63  ;;  %1186 = vmatprep.mubr.f32.mxu1 %v585_v59 }
 0x11c   : > { %1187 = vmatmul.mubr.f32.gmra.mrb[14].mxu1 %v586_v61  ;;  %v588_v3 = vmax.f32 %v522_v62, 0.0 }
 0x11d   : > { %v587_v1 = vmax.f32 %v517_v0, 0.0  ;;  %v1114_v2 = vpop.f32.mrb[24].mxu0 }
 0x11e   : > { %v532_v4 = vadd.f32 %v1114_v2, %v1557_v57  ;;  %v526_v5 = vpop.f32.mrb[25].mxu0 }
 0x11f   : > { %v527_v6 = vadd.f32 %v1557_v57, %v526_v5  ;;  %1189 = vmatprep.mubr.f32.mxu1 %v587_v1 }
 0x120   : > { %1190 = vmatmul.mubr.f32.gmra.mrb[16].mxu1 %v588_v3  ;;  %v590_v9 = vmax.f32 %v532_v4, 0.0 }
 0x121   : > { %v589_v7 = vmax.f32 %v527_v6, 0.0  ;;  %v1117_v8 = vpop.f32.mrb[26].mxu0 }
 0x122   : > { %v542_v10 = vadd.f32 %v1117_v8, %v1557_v57  ;;  %v536_v11 = vpop.f32.mrb[27].mxu0 }
 0x123   : > { %v537_v12 = vadd.f32 %v1557_v57, %v536_v11  ;;  %1192 = vmatprep.mubr.f32.mxu1 %v589_v7 }
 0x124   : > { %1193 = vmatmul.mubr.f32.gmra.mrb[18].mxu1 %v590_v9  ;;  %v592_v15 = vmax.f32 %v542_v10, 0.0 }
 0x125   : > { %v591_v13 = vmax.f32 %v537_v12, 0.0  ;;  %v1120_v14 = vpop.f32.mrb[28].mxu0 }
 0x126   : > { %v552_v16 = vadd.f32 %v1120_v14, %v1557_v57  ;;  %v546_v17 = vpop.f32.mrb[29].mxu0 }
 0x127   : > { %v547_v18 = vadd.f32 %v1557_v57, %v546_v17  ;;  %1195 = vmatprep.mubr.f32.mxu1 %v591_v13 }
 0x128   : > { %1196 = vmatmul.mubr.f32.gmra.mrb[20].mxu1 %v592_v15  ;;  %v594_v21 = vmax.f32 %v552_v16, 0.0 }
 0x129   : > { %v593_v19 = vmax.f32 %v547_v18, 0.0  ;;  %v1123_v20 = vpop.f32.mrb[30].mxu0 }
 0x12a   : > { %v562_v22 = vadd.f32 %v1123_v20, %v1557_v57  ;;  %v556_v23 = vpop.f32.mrb[31].mxu0 }
 0x12b   : > { %v557_v24 = vadd.f32 %v1557_v57, %v556_v23  ;;  %1198 = vmatprep.mubr.f32.mxu1 %v593_v19 }
 0x12c   : > { %1199 = vmatmul.mubr.f32.gmra.mrb[22].mxu1 %v594_v21  ;;  %v596_v26 = vmax.f32 %v562_v22, 0.0 }
 0x12d   : > { %v595_v25 = vmax.f32 %v557_v24, 0.0 }
 0x12f   : > { %1201 = vmatprep.mubr.f32.mxu1 %v595_v25 }
 0x130   : > { %1202 = vmatmul.mubr.f32.gmra.mrb[24].mxu1 %v596_v26 }
 0x1c7   : > { %v1158_v27 = vpop.f32.mrb[32].mxu0 }
 0x1c8   : > { %839 = vst [vmem:[%s1594_s10 + $0x8] sm:$0xff] %v1158_v27  ;;  %v679_v57 = vpop.f32.mrb[33].mxu0 }
 0x1c9   : > { %838 = vst [vmem:[%s1594_s10] sm:$0xff] %v679_v57 }
 0x1cb   : > { %v1161_v28 = vpop.f32.mrb[34].mxu0 }
 0x1cc   : > { %841 = vst [vmem:[%s1594_s10 + $0x18] sm:$0xff] %v1161_v28  ;;  %v689_v29 = vpop.f32.mrb[35].mxu0 }
 0x1cd   : > { %840 = vst [vmem:[%s1594_s10 + $0x10] sm:$0xff] %v689_v29 }
 0x1cf   : > { %v1164_v30 = vpop.f32.mrb[36].mxu0 }
 0x1d0   : > { %843 = vst [vmem:[%s1594_s10 + $0x28] sm:$0xff] %v1164_v30  ;;  %v699_v31 = vpop.f32.mrb[37].mxu0 }
 0x1d1   : > { %842 = vst [vmem:[%s1594_s10 + $0x20] sm:$0xff] %v699_v31 }
 0x1d3   : > { %v1167_v32 = vpop.f32.mrb[0].mxu1 }
 0x1d4   : > { %845 = vst [vmem:[%s1594_s10 + $0x38] sm:$0xff] %v1167_v32  ;;  %v709_v33 = vpop.f32.mrb[1].mxu1 }
 0x1d5   : > { %844 = vst [vmem:[%s1594_s10 + $0x30] sm:$0xff] %v709_v33 }
 0x1d7   : > { %v1170_v34 = vpop.f32.mrb[2].mxu1 }
 0x1d8   : > { %847 = vst [vmem:[%s1594_s10 + $0x48] sm:$0xff] %v1170_v34  ;;  %v719_v35 = vpop.f32.mrb[3].mxu1 }
 0x1d9   : > { %846 = vst [vmem:[%s1594_s10 + $0x40] sm:$0xff] %v719_v35 }
 0x1db   : > { %v1173_v36 = vpop.f32.mrb[4].mxu1 }
 0x1dc   : > { %849 = vst [vmem:[%s1594_s10 + $0x58] sm:$0xff] %v1173_v36  ;;  %v729_v37 = vpop.f32.mrb[5].mxu1 }
 0x1dd   : > { %848 = vst [vmem:[%s1594_s10 + $0x50] sm:$0xff] %v729_v37 }
 0x1df   : > { %v1176_v38 = vpop.f32.mrb[6].mxu1 }
 0x1e0   : > { %851 = vst [vmem:[%s1594_s10 + $0x68] sm:$0xff] %v1176_v38  ;;  %v739_v39 = vpop.f32.mrb[7].mxu1 }
 0x1e1   : > { %850 = vst [vmem:[%s1594_s10 + $0x60] sm:$0xff] %v739_v39 }
 0x1e3   : > { %v1179_v40 = vpop.f32.mrb[8].mxu1 }
 0x1e4   : > { %853 = vst [vmem:[%s1594_s10 + $0x78] sm:$0xff] %v1179_v40  ;;  %v749_v41 = vpop.f32.mrb[9].mxu1 }
 0x1e5   : > { %852 = vst [vmem:[%s1594_s10 + $0x70] sm:$0xff] %v749_v41 }
 0x1e7   : > { %v1182_v42 = vpop.f32.mrb[10].mxu1 }
 0x1e8   : > { %855 = vst [vmem:[%s1594_s10 + $0x88] sm:$0xff] %v1182_v42  ;;  %v759_v43 = vpop.f32.mrb[11].mxu1 }
 0x1e9   : > { %854 = vst [vmem:[%s1594_s10 + $0x80] sm:$0xff] %v759_v43 }
 0x1eb   : > { %v1185_v44 = vpop.f32.mrb[12].mxu1 }
 0x1ec   : > { %857 = vst [vmem:[%s1594_s10 + $0x98] sm:$0xff] %v1185_v44  ;;  %v769_v45 = vpop.f32.mrb[13].mxu1 }
 0x1ed   : > { %856 = vst [vmem:[%s1594_s10 + $0x90] sm:$0xff] %v769_v45 }
 0x1ef   : > { %v1188_v46 = vpop.f32.mrb[14].mxu1 }
 0x1f0   : > { %859 = vst [vmem:[%s1594_s10 + $0xa8] sm:$0xff] %v1188_v46  ;;  %v779_v47 = vpop.f32.mrb[15].mxu1 }
 0x1f1   : > { %858 = vst [vmem:[%s1594_s10 + $0xa0] sm:$0xff] %v779_v47 }
 0x1f3   : > { %v1191_v48 = vpop.f32.mrb[16].mxu1 }
 0x1f4   : > { %861 = vst [vmem:[%s1594_s10 + $0xb8] sm:$0xff] %v1191_v48  ;;  %v789_v49 = vpop.f32.mrb[17].mxu1 }
 0x1f5   : > { %860 = vst [vmem:[%s1594_s10 + $0xb0] sm:$0xff] %v789_v49 }
 0x1f7   : > { %v1194_v50 = vpop.f32.mrb[18].mxu1 }
 0x1f8   : > { %863 = vst [vmem:[%s1594_s10 + $0xc8] sm:$0xff] %v1194_v50  ;;  %v799_v51 = vpop.f32.mrb[19].mxu1 }
 0x1f9   : > { %862 = vst [vmem:[%s1594_s10 + $0xc0] sm:$0xff] %v799_v51 }
 0x1fb   : > { %v1197_v52 = vpop.f32.mrb[20].mxu1 }
 0x1fc   : > { %865 = vst [vmem:[%s1594_s10 + $0xd8] sm:$0xff] %v1197_v52  ;;  %v809_v53 = vpop.f32.mrb[21].mxu1 }
 0x1fd   : > { %864 = vst [vmem:[%s1594_s10 + $0xd0] sm:$0xff] %v809_v53 }
 0x1ff   : > { %v1200_v54 = vpop.f32.mrb[22].mxu1 }
 0x200   : > { %867 = vst [vmem:[%s1594_s10 + $0xe8] sm:$0xff] %v1200_v54  ;;  %v819_v55 = vpop.f32.mrb[23].mxu1 }
 0x201   : > { %866 = vst [vmem:[%s1594_s10 + $0xe0] sm:$0xff] %v819_v55 }
 0x203   : > { %v1203_v56 = vpop.f32.mrb[24].mxu1 }
 0x204   : > { %869 = vst [vmem:[%s1594_s10 + $0xf8] sm:$0xff] %v1203_v56  ;;  %v829_v58 = vpop.f32.mrb[25].mxu1 }
 0x205   : > { %868 = vst [vmem:[%s1594_s10 + $0xf0] sm:$0xff] %v829_v58 }
 0x206   : > { %1306 = shalt.err (!%p1303_p3)
}
 0x207   : > { %s1307_s30 = scalar_lea.hbm %s1631_s22, 4096  ;;  %s1311_s7 = scalar_lea.hbm %s1684_s4, 8192 }
 0x208   : > { %p1308_p4 = scmp.ne.s32.totalorder %s1631_s22, %s1307_s30  ;;  %p1312_p9 = scmp.lt.u32.totalorder %s1631_s22, %s1684_s4 }
 0x209   : > { %p1313_p10 = scmp.lt.u32.totalorder %s1311_s7, %s1307_s30  ;;  %p1315_p12 = scmp.lt.u32.totalorder %s1307_s30, %s1631_s22 }
 0x20a   : > { %p1309_p7 = pnand %p1308_p4, %p1423_p5 }
 0x20b   : > { %p1314_p11 = por %p1313_p10, %p1312_p9 }
 0x20c   : > { %p1310_p8 = pneg %p1309_p7 }
 0x20d   : > { %p1316_p13 = por %p1315_p12, %p1314_p11 }
 0x20f   : > { %p1317_p0 = pnand %p1316_p13, %p1310_p8 }
 0x211   : > { %1320 = shalt.err (!%p1317_p0)
}
 0x212   : > { %s1358_s9 = smov 128   ;;  %s1359_s10 = smov 8  }
 0x213   : > { %1252 = dma.vmem_to_hbm [thread:$0]  (%p1423_p5), %s1633_s12, 4096, %s1631_s22, %s1639_s19, %s1358_s9, %s1358_s9, %s1359_s10  }
 0x214 PF: > { %p1258_p1 = scmp.ge.s32.totalorder %s1355_s18, 2  ;;  %s899_s11 = sand.u32 1, %s1343_s15  }
 0x215   : > { %s900_s13 = scalar_lea.sflag [#allocation3], %s899_s11 }
 0x216   : > { %p1255_p2 = pnand %p1258_p1, %p1427_p6 }
 0x218   : > { %1338 = dma.done.wait (!%p1255_p2), %s900_s13, 4096  }
 0x219   : > { %1340 = vsyncadd (!%p1255_p2), %s900_s13, 4294963200  ;;  %p14_p3 = scmp.ge.s32.totalorder %s1410_s21, 4   ;;  %s1687_s15 = smov %s1347_s16 }
 0x21a   : > { %s1688_s16 = smov %s1351_s17  ;;  %s1689_s17 = smov %s1421_s24 }
 0x21b   : > { %s1690_s18 = smov %s1410_s21  ;;  %16 = sbr.rel (!%p14_p3) target bundleno = 3 (0x3), region = 71 }
 0x222   :  { %905 = vsyncpa [#allocation3], 1 }
 0x223   :  { %907 = vsyncpa [#allocation3 + $0x1], 1 }

</bundles_post_ra>
